<compile_context>
chip_gen: v7x
topology: tpu7x:2x2x1
jax: 0.10.0
libtpu: 0.0.40
codegen_flags: <defaults>
</compile_context>

<pallas_src>
import functools
from types import SimpleNamespace

import jax
import jax.numpy as jnp
from jax.experimental import pallas as pl
from jax.experimental.pallas import tpu as pltpu

LANE = 128      # decoder logits padded to one full lane group (lane-dense stores)
NEG = -1e30     # mask value, used identically in-kernel and in the host wrapper


def _pad_up(n, m):
    return ((n + m - 1) // m) * m


# ---------------------------------------------------------------------------
# Kernel 1: single Controller.forward step (API-parity path)
# ---------------------------------------------------------------------------
def _step_kernel(bidx_ref, x_ref, h_ref, c_ref, w_ih_ref, w_hh_ref, b_g_ref,
                 w_dec_ref, b_dec_ref,
                 logits_ref, hx_ref, cx_ref, *, hid, apply_tanh_c, tanh_c):
    del bidx_ref  # consumed by the decoder BlockSpec index_map only
    H = hid
    x = x_ref[...]
    h = h_ref[...]
    c = c_ref[...]

    # LSTMCell gates: x @ W_ih + h @ W_hh + b (no lane-axis concat).
    gates = (jnp.dot(x, w_ih_ref[...], preferred_element_type=jnp.float32)
             + jnp.dot(h, w_hh_ref[...], preferred_element_type=jnp.float32)
             + b_g_ref[...])
    sig = jax.nn.sigmoid(gates)                 # i, f, o gates
    i_g = sig[:, 0 * H:1 * H]
    f_g = sig[:, 1 * H:2 * H]
    o_g = sig[:, 3 * H:4 * H]
    g_g = jnp.tanh(gates[:, 2 * H:3 * H])       # tanh only where needed

    c_new = f_g * c + i_g * g_g
    h_new = o_g * jnp.tanh(c_new)

    logits = jnp.dot(h_new, w_dec_ref[...],
                     preferred_element_type=jnp.float32) + b_dec_ref[...]
    if apply_tanh_c:
        # 1/temperature is pre-folded into W_dec/b_dec -> no divide here.
        logits = tanh_c * jnp.tanh(logits)

    logits_ref[...] = logits                    # lane-dense [B, 128] store
    hx_ref[...] = h_new
    cx_ref[...] = c_new


@functools.partial(jax.jit, static_argnames=("apply_tanh_c", "tanh_c"))
def _controller_step(block_idx, embed, h, c, w_ih, w_hh, b_gates,
                     w_dec_all, b_dec_all, *, apply_tanh_c, tanh_c):
    B, H = embed.shape
    S_pad = w_dec_all.shape[-1]

    kernel = functools.partial(_step_kernel, hid=H,
                               apply_tanh_c=apply_tanh_c, tanh_c=float(tanh_c))

    grid_spec = pltpu.PrefetchScalarGridSpec(
        num_scalar_prefetch=1,          # block_idx lands in SMEM
        grid=(1,),
        in_specs=[
            pl.BlockSpec((B, H), lambda i, b: (0, 0)),               # embed
            pl.BlockSpec((B, H), lambda i, b: (0, 0)),               # h
            pl.BlockSpec((B, H), lambda i, b: (0, 0)),               # c
            pl.BlockSpec((H, 4 * H), lambda i, b: (0, 0)),           # W_ih
            pl.BlockSpec((H, 4 * H), lambda i, b: (0, 0)),           # W_hh
            pl.BlockSpec((1, 4 * H), lambda i, b: (0, 0)),           # b_ih + b_hh
            pl.BlockSpec((None, H, S_pad), lambda i, b: (b[0], 0, 0)),  # W_dec
            pl.BlockSpec((None, 1, S_pad), lambda i, b: (b[0], 0, 0)),  # b_dec
        ],
        out_specs=[
            pl.BlockSpec((B, S_pad), lambda i, b: (0, 0)),           # logits
            pl.BlockSpec((B, H), lambda i, b: (0, 0)),               # hx
            pl.BlockSpec((B, H), lambda i, b: (0, 0)),               # cx
        ],
    )

    cost = pl.CostEstimate(
        flops=2 * B * H * 4 * H * 2 + 2 * B * H * S_pad,
        transcendentals=B * (4 * H + 2 * H + S_pad),
        bytes_accessed=4 * (3 * B * H + 2 * H * 4 * H + 4 * H
                            + H * S_pad + S_pad + B * S_pad + 2 * B * H),
    )

    # TODO(synk): input_output_aliases (h->hx, c->cx) was suggested for the
    # per-step path; skipped here because the fused rollout below keeps state
    # resident in VMEM and supersedes this path for performance.
    logits_pad, hx, cx = pl.pallas_call(
        kernel,
        out_shape=(
            jax.ShapeDtypeStruct((B, S_pad), jnp.float32),
            jax.ShapeDtypeStruct((B, H), jnp.float32),
            jax.ShapeDtypeStruct((B, H), jnp.float32),
        ),
        grid_spec=grid_spec,
        compiler_params=pltpu.CompilerParams(dimension_semantics=("arbitrary",)),
        cost_estimate=cost,
    )(block_idx, embed, h, c, w_ih, w_hh, b_gates, w_dec_all, b_dec_all)
    return logits_pad, hx, cx


# ---------------------------------------------------------------------------
# Kernel 2: fused rollout — the whole sample() forward loop in ONE pallas_call
# ---------------------------------------------------------------------------
def _rollout_kernel(bidx_s, size_s, off_s,
                    x0_ref, h0_ref, c0_ref, enc_ref,
                    w_ih_ref, w_hh_ref, b_g_ref,
                    w_dec_ref, b_dec_ref, gum_ref,
                    logits_ref, hx_ref, cx_ref,
                    x_scr, h_scr, c_scr,
                    *, hid, apply_tanh_c, tanh_c):
    H = hid
    step = pl.program_id(0)
    n_steps = pl.num_programs(0)

    @pl.when(step == 0)
    def _():
        # static_inputs / init_hidden
        x_scr[...] = x0_ref[...]
        h_scr[...] = h0_ref[...]
        c_scr[...] = c0_ref[...]

    x = x_scr[...]
    h = h_scr[...]
    c = c_scr[...]

    # LSTMCell gates: x @ W_ih + h @ W_hh + b (no lane-axis concat).
    gates = (jnp.dot(x, w_ih_ref[...], preferred_element_type=jnp.float32)
             + jnp.dot(h, w_hh_ref[...], preferred_element_type=jnp.float32)
             + b_g_ref[...])
    sig = jax.nn.sigmoid(gates)
    i_g = sig[:, 0 * H:1 * H]
    f_g = sig[:, 1 * H:2 * H]
    o_g = sig[:, 3 * H:4 * H]
    g_g = jnp.tanh(gates[:, 2 * H:3 * H])

    c_new = f_g * c + i_g * g_g
    h_new = o_g * jnp.tanh(c_new)
    h_scr[...] = h_new
    c_scr[...] = c_new

    # Decoder for this step: dynamic first-axis read of the resident pack.
    bidx = bidx_s[step]
    logits = (jnp.dot(h_new, w_dec_ref[bidx],
                      preferred_element_type=jnp.float32) + b_dec_ref[bidx])
    if apply_tanh_c:
        logits = tanh_c * jnp.tanh(logits)
    logits_ref[...] = logits                         # lane-dense [B, 128] store

    # In-kernel token selection (gumbel-max == softmax multinomial) and the
    # encoder row lookup for the next step's input embedding.
    B, lane = logits.shape
    t_pad = enc_ref.shape[0]
    lane_ids = jax.lax.broadcasted_iota(jnp.int32, (B, lane), 1)
    z = jnp.where(lane_ids < size_s[step], logits + gum_ref[...], NEG)
    m = jnp.max(z, axis=-1, keepdims=True)
    lane_f = lane_ids.astype(jnp.float32)
    action = jnp.min(jnp.where(z >= m, lane_f, float(lane)),
                     axis=-1, keepdims=True)                         # [B, 1]
    tok = action + off_s[step].astype(jnp.float32)                   # [B, 1]
    row_ids = jax.lax.broadcasted_iota(jnp.int32, (B, t_pad), 1).astype(jnp.float32)
    onehot = (row_ids == tok).astype(jnp.float32)                    # [B, T_pad]
    x_scr[...] = jnp.dot(onehot, enc_ref[...],
                         preferred_element_type=jnp.float32)         # next embed

    @pl.when(step == n_steps - 1)
    def _():
        hx_ref[...] = h_new                          # written to HBM exactly once
        cx_ref[...] = c_new


@functools.partial(jax.jit, static_argnames=("apply_tanh_c", "tanh_c"))
def _rollout_call(bidx, sizes, offsets, x0, h0, c0, enc_pad,
                  w_ih, w_hh, b_gates, w_dec_all, b_dec_all, gumbel,
                  *, apply_tanh_c, tanh_c):
    n_steps = gumbel.shape[0]
    B, H = x0.shape
    T_pad = enc_pad.shape[0]
    n_dec, _, S_pad = w_dec_all.shape

    kernel = functools.partial(_rollout_kernel, hid=H,
                               apply_tanh_c=apply_tanh_c, tanh_c=float(tanh_c))

    const2 = lambda i, b, s, o: (0, 0)
    const3 = lambda i, b, s, o: (0, 0, 0)

    grid_spec = pltpu.PrefetchScalarGridSpec(
        num_scalar_prefetch=3,                 # block_idx / size / offset schedules
        grid=(n_steps,),
        in_specs=[
            pl.BlockSpec((B, H), const2),                  # x0 (static input)
            pl.BlockSpec((B, H), const2),                  # h0
            pl.BlockSpec((B, H), const2),                  # c0
            pl.BlockSpec((T_pad, H), const2),              # encoder (resident)
            pl.BlockSpec((H, 4 * H), const2),              # W_ih    (resident)
            pl.BlockSpec((H, 4 * H), const2),              # W_hh    (resident)
            pl.BlockSpec((1, 4 * H), const2),              # bias    (resident)
            pl.BlockSpec((n_dec, H, S_pad), const3),       # all decoders (resident)
            pl.BlockSpec((n_dec, 1, S_pad), const3),       # all dec biases
            pl.BlockSpec((None, B, S_pad), lambda i, b, s, o: (i, 0, 0)),  # gumbel[i]
        ],
        out_specs=[
            pl.BlockSpec((None, B, S_pad), lambda i, b, s, o: (i, 0, 0)),  # logits[i]
            pl.BlockSpec((B, H), const2),                  # final hx
            pl.BlockSpec((B, H), const2),                  # final cx
        ],
        scratch_shapes=[
            pltpu.VMEM((B, H), jnp.float32),   # x state (current input embedding)
            pltpu.VMEM((B, H), jnp.float32),   # h state
            pltpu.VMEM((B, H), jnp.float32),   # c state
        ],
    )

    cost = pl.CostEstimate(
        flops=n_steps * (2 * B * H * 4 * H * 2 + 2 * B * H * S_pad
                         + 2 * B * T_pad * H),
        transcendentals=n_steps * B * (4 * H + 2 * H + S_pad),
        bytes_accessed=4 * (2 * H * 4 * H + 4 * H + n_dec * (H + 1) * S_pad
                            + T_pad * H + 3 * B * H
                            + n_steps * 2 * B * S_pad + 2 * B * H),
    )

    return pl.pallas_call(
        kernel,
        out_shape=(
            jax.ShapeDtypeStruct((n_steps, B, S_pad), jnp.float32),
            jax.ShapeDtypeStruct((B, H), jnp.float32),
            jax.ShapeDtypeStruct((B, H), jnp.float32),
        ),
        grid_spec=grid_spec,
        compiler_params=pltpu.CompilerParams(dimension_semantics=("arbitrary",)),
        cost_estimate=cost,
    )(bidx, sizes, offsets, x0, h0, c0, enc_pad,
      w_ih, w_hh, b_gates, w_dec_all, b_dec_all, gumbel)


# ---------------------------------------------------------------------------
# Python wrappers with the Controller interface
# ---------------------------------------------------------------------------
def _tanh_flags(args):
    apply_tanh_c, tanh_c = False, 1.0
    if args.mode == "train":
        if args.use_softmax_tanh_c:
            apply_tanh_c, tanh_c = True, float(args.tanh_c)
        elif args.use_softmax_tanh_c_temperature:
            apply_tanh_c, tanh_c = True, float(args.tanh_c)
    return apply_tanh_c, tanh_c


def _logit_prescale(args):
    # Exact fold: in the temperature branch logits only ever feed tanh(x / T),
    # so scaling W_dec/b_dec by 1/T once at param-build time is equivalent.
    if (args.mode == "train" and not args.use_softmax_tanh_c
            and args.use_softmax_tanh_c_temperature):
        return 1.0 / float(args.softmax_temperature)
    return 1.0


def controller_forward(params, inputs, hidden, block_idx, is_embed, args):
    """Pallas equivalent of Controller.forward (single step, API parity)."""
    if is_embed:
        embed = inputs
    else:
        embed = params["encoder"][inputs]   # tiny [B] row gather (plain-JAX glue)
    h, c = hidden
    apply_tanh_c, tanh_c = _tanh_flags(args)
    bidx = jnp.asarray([block_idx], dtype=jnp.int32)
    logits_pad, hx, cx = _controller_step(
        bidx, embed, h, c,
        params["w_ih"], params["w_hh"], params["b_gates"],
        params["w_dec_all"], params["b_dec_all"],
        apply_tanh_c=apply_tanh_c, tanh_c=tanh_c)
    size = params["num_tokens"][block_idx]
    return logits_pad[:, :size], (hx, cx)


def controller_rollout(params, batch_size, gumbel, args):
    """Fused NAS rollout: all forward steps + in-kernel token sampling and
    encoder lookups inside ONE pallas_call. Returns (logits, actions, (hx,cx))."""
    num_tokens = params["num_tokens"]
    H = params["w_ih"].shape[0]
    n_steps = gumbel.shape[0]
    bidx = jnp.arange(n_steps, dtype=jnp.int32)           # sample()'s step schedule
    sizes = jnp.asarray([num_tokens[i] for i in range(n_steps)], dtype=jnp.int32)
    offsets = jnp.asarray([sum(num_tokens[:(i % 2)]) for i in range(n_steps)],
                          dtype=jnp.int32)
    zeros = jnp.zeros((batch_size, H), jnp.float32)
    apply_tanh_c, tanh_c = _tanh_flags(args)
    logits_all, hx, cx = _rollout_call(
        bidx, sizes, offsets, zeros, zeros, zeros, params["encoder_pad"],
        params["w_ih"], params["w_hh"], params["b_gates"],
        params["w_dec_all"], params["b_dec_all"], gumbel,
        apply_tanh_c=apply_tanh_c, tanh_c=tanh_c)
    # Recompute the in-kernel action selection on the host side (bit-identical:
    # same logits, same gumbel noise, same mask / first-max rule).
    lane_ids = jnp.arange(LANE, dtype=jnp.int32)[None, None, :]
    z = jnp.where(lane_ids < sizes[:, None, None], logits_all + gumbel, NEG)
    actions = jnp.argmax(z, axis=-1).astype(jnp.int32)
    return logits_all, actions, (hx, cx)


# ---------------------------------------------------------------------------
# Parameter construction (mirrors Controller.__init__/reset_parameters)
# ---------------------------------------------------------------------------
def make_controller_params(args, key):
    H = args.controller_hid
    if args.network_type in ("rnn", "seq2seq", "classification"):
        num_tokens = [len(args.rnn_activations)]
        for idx in range(args.num_blocks):
            num_tokens += [idx + 1, len(args.rnn_activations)]
    elif args.network_type == "cnn":
        num_tokens = [len(args.cnn_types), args.num_blocks]
    else:
        raise Exception(f"Unknown network type: {args.network_type}")
    num_total_tokens = sum(num_tokens)
    n_dec = len(num_tokens)

    init_range = 0.1
    keys = jax.random.split(key, 5 + n_dec)
    u = lambda k, shape: jax.random.uniform(k, shape, jnp.float32,
                                            -init_range, init_range)

    encoder = u(keys[0], (num_total_tokens, H))          # nn.Embedding weight
    w_ih = u(keys[1], (H, 4 * H))                        # LSTMCell W_ih^T (i,f,g,o)
    w_hh = u(keys[2], (H, 4 * H))                        # LSTMCell W_hh^T
    b_gates = u(keys[3], (1, 4 * H)) + u(keys[4], (1, 4 * H))   # b_ih + b_hh

    # Pad encoder rows to a sublane multiple so the table stays VMEM-resident.
    t_pad = max(_pad_up(num_total_tokens, 8), 8)
    encoder_pad = jnp.zeros((t_pad, H), jnp.float32).at[:num_total_tokens].set(encoder)

    # 1/softmax_temperature folded into decoder weights (valid: logits feed
    # tanh(logits / T) directly in that branch).
    scale = _logit_prescale(args)
    w_dec_all = jnp.zeros((n_dec, H, LANE), jnp.float32)
    b_dec_all = jnp.zeros((n_dec, 1, LANE), jnp.float32)   # decoder.bias.fill_(0)
    for idx, size in enumerate(num_tokens):
        w = u(keys[5 + idx], (H, size)) * scale
        w_dec_all = w_dec_all.at[idx, :, :size].set(w)

    params = {
        "encoder": encoder,
        "encoder_pad": encoder_pad,
        "w_ih": w_ih,
        "w_hh": w_hh,
        "b_gates": b_gates,
        "w_dec_all": w_dec_all,
        "b_dec_all": b_dec_all,
        "num_tokens": tuple(num_tokens),
    }
    return params, num_tokens


# ---------------------------------------------------------------------------
# Pure-JAX references for correctness checks
# ---------------------------------------------------------------------------
def _reference_forward(params, embed, hidden, block_idx, args):
    h, c = hidden
    H = embed.shape[1]
    gates = embed @ params["w_ih"] + h @ params["w_hh"] + params["b_gates"]
    i_g = jax.nn.sigmoid(gates[:, 0 * H:1 * H])
    f_g = jax.nn.sigmoid(gates[:, 1 * H:2 * H])
    g_g = jnp.tanh(gates[:, 2 * H:3 * H])
    o_g = jax.nn.sigmoid(gates[:, 3 * H:4 * H])
    c_new = f_g * c + i_g * g_g
    h_new = o_g * jnp.tanh(c_new)
    logits = h_new @ params["w_dec_all"][block_idx] + params["b_dec_all"][block_idx]
    apply_tanh_c, tanh_c = _tanh_flags(args)
    if apply_tanh_c:
        logits = tanh_c * jnp.tanh(logits)
    size = params["num_tokens"][block_idx]
    return logits[:, :size], (h_new, c_new)


def _reference_rollout(params, batch_size, actions, args):
    """Pure-JAX rollout, teacher-forced with the kernel's sampled actions."""
    num_tokens = params["num_tokens"]
    H = params["w_ih"].shape[0]
    zeros = jnp.zeros((batch_size, H), jnp.float32)
    x, h, c = zeros, zeros, zeros
    logits_steps = []
    for s in range(actions.shape[0]):
        logits, (h, c) = _reference_forward(params, x, (h, c), s, args)
        logits_steps.append(logits)
        offset = sum(num_tokens[:(s % 2)])
        x = params["encoder"][actions[s] + offset]
    return logits_steps, (h, c)


# ---------------------------------------------------------------------------
if __name__ == "__main__":
    args = SimpleNamespace(
        network_type="rnn",
        rnn_activations=["tanh", "relu", "sigmoid", "identity"],
        num_blocks=4,
        controller_hid=32,
        mode="train",
        use_softmax_tanh_c=True,
        use_softmax_tanh_c_temperature=False,
        tanh_c=2.5,
        softmax_temperature=5.0,
        use_single_controller=False,
        use_dual_controller=False,
        use_atten_controller=False,
        cuda=False,
    )

    key = jax.random.PRNGKey(0)
    kp, kg = jax.random.split(key)
    params, num_tokens = make_controller_params(args, kp)
    H = args.controller_hid

    # ---- 1) Single-step forward (the literal Controller.forward API) -------
    B1 = 2
    h0 = jnp.zeros((B1, H), jnp.float32)
    c0 = jnp.zeros((B1, H), jnp.float32)
    x0 = jnp.zeros((B1, H), jnp.float32)          # static_inputs[B1]

    logits0, (hx, cx) = controller_forward(params, x0, (h0, c0),
                                           block_idx=0, is_embed=True, args=args)
    ref0, (rhx, rcx) = _reference_forward(params, x0, (h0, c0), 0, args)

    token_ids = jnp.array([1, 3], dtype=jnp.int32)
    logits1, (hx1, cx1) = controller_forward(params, token_ids, (hx, cx),
                                             block_idx=1, is_embed=False, args=args)
    embed1 = params["encoder"][token_ids]
    ref1, (rhx1, rcx1) = _reference_forward(params, embed1, (rhx, rcx), 1, args)

    # ---- 2) Fused rollout (sample()'s forward loop in ONE pallas_call) -----
    B = 8                                          # batch of architecture samples
    n_steps = 2 * (args.num_blocks - 1) + 1        # sample()'s per-dag step count
    u = jax.random.uniform(kg, (n_steps, B, LANE), jnp.float32, 1e-6, 1.0 - 1e-6)
    gumbel = -jnp.log(-jnp.log(u))
    logits_all, actions, (hxr, cxr) = controller_rollout(params, B, gumbel, args)

    jax.block_until_ready((logits0, logits1, logits_all, actions, hxr, cxr))

    # ---- checks -------------------------------------------------------------
    assert logits0.shape == (B1, num_tokens[0])
    assert logits1.shape == (B1, num_tokens[1])
    assert bool(jnp.all(jnp.isfinite(logits0))) and bool(jnp.all(jnp.isfinite(logits1)))
    assert bool(jnp.allclose(logits0, ref0, atol=2e-2, rtol=2e-2))
    assert bool(jnp.allclose(logits1, ref1, atol=2e-2, rtol=2e-2))
    assert bool(jnp.allclose(hx1, rhx1, atol=2e-2, rtol=2e-2))
    assert bool(jnp.allclose(cx1, rcx1, atol=2e-2, rtol=2e-2))

    assert logits_all.shape == (n_steps, B, LANE)
    assert actions.shape == (n_steps, B)
    assert bool(jnp.all(jnp.isfinite(logits_all)))

    ref_steps, (rh, rc) = _reference_rollout(params, B, actions, args)
    for s in range(n_steps):
        size = num_tokens[s]
        assert bool(jnp.all(actions[s] >= 0)) and bool(jnp.all(actions[s] < size))
        assert bool(jnp.allclose(logits_all[s, :, :size], ref_steps[s],
                                 atol=2e-2, rtol=2e-2))
    assert bool(jnp.allclose(hxr, rh, atol=2e-2, rtol=2e-2))
    assert bool(jnp.allclose(cxr, rc, atol=2e-2, rtol=2e-2))

    print("KERNEL_OK")
</pallas_src>

<mosaic_0001>
module attributes {stable_mosaic.version = 11 : i64} {
  func.func @_step_kernel(%arg0: i32, %arg1: memref<1xi32, #tpu.memory_space<smem>>, %arg2: memref<2x32xf32, #tpu.memory_space<vmem>>, %arg3: memref<2x32xf32, #tpu.memory_space<vmem>>, %arg4: memref<2x32xf32, #tpu.memory_space<vmem>>, %arg5: memref<32x128xf32, #tpu.memory_space<vmem>>, %arg6: memref<32x128xf32, #tpu.memory_space<vmem>>, %arg7: memref<1x128xf32, #tpu.memory_space<vmem>>, %arg8: memref<1x32x128xf32, #tpu.memory_space<vmem>>, %arg9: memref<1x1x128xf32, #tpu.memory_space<vmem>>, %arg10: memref<2x128xf32, #tpu.memory_space<vmem>>, %arg11: memref<2x32xf32, #tpu.memory_space<vmem>>, %arg12: memref<2x32xf32, #tpu.memory_space<vmem>>) attributes {dimension_semantics = [#tpu.dimension_semantics<arbitrary>], iteration_bounds = array<i64: 1>, scalar_prefetch = 1 : i64, scratch_operands = 0 : i64, tpu.core_type = #tpu.core_type<tc>, window_params = [{pipeline_mode = #tpu.pipeline_mode<synchronous>, transform_indices = @transform_0, window_bounds = array<i64: 2, 32>}, {pipeline_mode = #tpu.pipeline_mode<synchronous>, transform_indices = @transform_1, window_bounds = array<i64: 2, 32>}, {pipeline_mode = #tpu.pipeline_mode<synchronous>, transform_indices = @transform_2, window_bounds = array<i64: 2, 32>}, {pipeline_mode = #tpu.pipeline_mode<synchronous>, transform_indices = @transform_3, window_bounds = array<i64: 32, 128>}, {pipeline_mode = #tpu.pipeline_mode<synchronous>, transform_indices = @transform_4, window_bounds = array<i64: 32, 128>}, {pipeline_mode = #tpu.pipeline_mode<synchronous>, transform_indices = @transform_5, window_bounds = array<i64: 1, 128>}, {transform_indices = @transform_6, window_bounds = array<i64: 1, 32, 128>}, {transform_indices = @transform_7, window_bounds = array<i64: 1, 1, 128>}, {pipeline_mode = #tpu.pipeline_mode<synchronous>, transform_indices = @transform_8, window_bounds = array<i64: 2, 128>}, {pipeline_mode = #tpu.pipeline_mode<synchronous>, transform_indices = @transform_9, window_bounds = array<i64: 2, 32>}, {pipeline_mode = #tpu.pipeline_mode<synchronous>, transform_indices = @transform_10, window_bounds = array<i64: 2, 32>}]} {
    %c0 = arith.constant 0 : index
    %c0_0 = arith.constant 0 : index
    %0 = vector.load %arg2[%c0, %c0_0] : memref<2x32xf32, #tpu.memory_space<vmem>>, vector<2x32xf32>
    %c0_1 = arith.constant 0 : index
    %c0_2 = arith.constant 0 : index
    %1 = vector.load %arg3[%c0_1, %c0_2] : memref<2x32xf32, #tpu.memory_space<vmem>>, vector<2x32xf32>
    %c0_3 = arith.constant 0 : index
    %c0_4 = arith.constant 0 : index
    %2 = vector.load %arg4[%c0_3, %c0_4] : memref<2x32xf32, #tpu.memory_space<vmem>>, vector<2x32xf32>
    %c0_5 = arith.constant 0 : index
    %c0_6 = arith.constant 0 : index
    %3 = vector.load %arg5[%c0_5, %c0_6] : memref<32x128xf32, #tpu.memory_space<vmem>>, vector<32x128xf32>
    %cst = arith.constant dense<0.000000e+00> : vector<2x128xf32>
    %4 = tpu.matmul %0, %3, %cst {dimension_numbers = #tpu.dot_dimension_numbers<[1], [0], [0], [1], [0, 0, 1, 1], [], []>} : vector<2x32xf32>, vector<32x128xf32>, vector<2x128xf32> -> vector<2x128xf32>
    %c0_7 = arith.constant 0 : index
    %c0_8 = arith.constant 0 : index
    %5 = vector.load %arg6[%c0_7, %c0_8] : memref<32x128xf32, #tpu.memory_space<vmem>>, vector<32x128xf32>
    %cst_9 = arith.constant dense<0.000000e+00> : vector<2x128xf32>
    %6 = tpu.matmul %1, %5, %cst_9 {dimension_numbers = #tpu.dot_dimension_numbers<[1], [0], [0], [1], [0, 0, 1, 1], [], []>} : vector<2x32xf32>, vector<32x128xf32>, vector<2x128xf32> -> vector<2x128xf32>
    %7 = arith.addf %4, %6 : vector<2x128xf32>
    %c0_10 = arith.constant 0 : index
    %c0_11 = arith.constant 0 : index
    %8 = vector.load %arg7[%c0_10, %c0_11] : memref<1x128xf32, #tpu.memory_space<vmem>>, vector<1x128xf32>
    %9 = vector.broadcast %8 : vector<1x128xf32> to vector<2x128xf32>
    %10 = arith.addf %7, %9 : vector<2x128xf32>
    %11 = arith.negf %10 : vector<2x128xf32>
    %12 = math.exp %11 : vector<2x128xf32>
    %cst_12 = arith.constant 1.000000e+00 : f32
    %13 = vector.broadcast %cst_12 : f32 to vector<2x128xf32>
    %14 = arith.addf %13, %12 : vector<2x128xf32>
    %15 = arith.divf %13, %14 : vector<2x128xf32>
    %16 = vector.extract_strided_slice %15 {offsets = [0, 0], sizes = [2, 32], strides = [1, 1]} : vector<2x128xf32> to vector<2x32xf32>
    %17 = vector.extract_strided_slice %15 {offsets = [0, 32], sizes = [2, 32], strides = [1, 1]} : vector<2x128xf32> to vector<2x32xf32>
    %18 = vector.extract_strided_slice %15 {offsets = [0, 96], sizes = [2, 32], strides = [1, 1]} : vector<2x128xf32> to vector<2x32xf32>
    %19 = vector.extract_strided_slice %10 {offsets = [0, 64], sizes = [2, 32], strides = [1, 1]} : vector<2x128xf32> to vector<2x32xf32>
    %20 = math.tanh %19 : vector<2x32xf32>
    %21 = arith.mulf %17, %2 : vector<2x32xf32>
    %22 = arith.mulf %16, %20 : vector<2x32xf32>
    %23 = arith.addf %21, %22 : vector<2x32xf32>
    %24 = math.tanh %23 : vector<2x32xf32>
    %25 = arith.mulf %18, %24 : vector<2x32xf32>
    %c0_13 = arith.constant 0 : index
    %c0_14 = arith.constant 0 : index
    %c0_15 = arith.constant 0 : index
    %26 = vector.load %arg8[%c0_13, %c0_14, %c0_15] : memref<1x32x128xf32, #tpu.memory_space<vmem>>, vector<1x32x128xf32>
    %27 = vector.shape_cast %26 : vector<1x32x128xf32> to vector<32x128xf32>
    %cst_16 = arith.constant dense<0.000000e+00> : vector<2x128xf32>
    %28 = tpu.matmul %25, %27, %cst_16 {dimension_numbers = #tpu.dot_dimension_numbers<[1], [0], [0], [1], [0, 0, 1, 1], [], []>} : vector<2x32xf32>, vector<32x128xf32>, vector<2x128xf32> -> vector<2x128xf32>
    %c0_17 = arith.constant 0 : index
    %c0_18 = arith.constant 0 : index
    %c0_19 = arith.constant 0 : index
    %29 = vector.load %arg9[%c0_17, %c0_18, %c0_19] : memref<1x1x128xf32, #tpu.memory_space<vmem>>, vector<1x1x128xf32>
    %30 = vector.shape_cast %29 : vector<1x1x128xf32> to vector<1x128xf32>
    %31 = vector.broadcast %30 : vector<1x128xf32> to vector<2x128xf32>
    %32 = arith.addf %28, %31 : vector<2x128xf32>
    %33 = math.tanh %32 : vector<2x128xf32>
    %cst_20 = arith.constant 2.500000e+00 : f32
    %34 = vector.broadcast %cst_20 : f32 to vector<2x128xf32>
    %35 = arith.mulf %34, %33 : vector<2x128xf32>
    %c0_21 = arith.constant 0 : index
    %c0_22 = arith.constant 0 : index
    %36 = vector.load %arg10[%c0_21, %c0_22] : memref<2x128xf32, #tpu.memory_space<vmem>>, vector<2x128xf32>
    tpu.vector_store %arg10[%c0_21, %c0_22], %35 {strides = array<i32>} : memref<2x128xf32, #tpu.memory_space<vmem>>, vector<2x128xf32>,
    %c0_23 = arith.constant 0 : index
    %c0_24 = arith.constant 0 : index
    %37 = vector.load %arg11[%c0_23, %c0_24] : memref<2x32xf32, #tpu.memory_space<vmem>>, vector<2x32xf32>
    tpu.vector_store %arg11[%c0_23, %c0_24], %25 {strides = array<i32>} : memref<2x32xf32, #tpu.memory_space<vmem>>, vector<2x32xf32>,
    %c0_25 = arith.constant 0 : index
    %c0_26 = arith.constant 0 : index
    %38 = vector.load %arg12[%c0_25, %c0_26] : memref<2x32xf32, #tpu.memory_space<vmem>>, vector<2x32xf32>
    tpu.vector_store %arg12[%c0_25, %c0_26], %23 {strides = array<i32>} : memref<2x32xf32, #tpu.memory_space<vmem>>, vector<2x32xf32>,
    return
  }
  func.func @transform_0(%arg0: i32, %arg1: memref<1xi32, #tpu.memory_space<smem>>) -> (i32, i32) {
    %c0_i32 = arith.constant 0 : i32
    %c0_i32_0 = arith.constant 0 : i32
    %c0_i32_1 = arith.constant 0 : i32
    return %c0_i32, %c0_i32_0 : i32, i32
  }
  func.func @transform_1(%arg0: i32, %arg1: memref<1xi32, #tpu.memory_space<smem>>) -> (i32, i32) {
    %c0_i32 = arith.constant 0 : i32
    %c0_i32_0 = arith.constant 0 : i32
    %c0_i32_1 = arith.constant 0 : i32
    return %c0_i32, %c0_i32_0 : i32, i32
  }
  func.func @transform_2(%arg0: i32, %arg1: memref<1xi32, #tpu.memory_space<smem>>) -> (i32, i32) {
    %c0_i32 = arith.constant 0 : i32
    %c0_i32_0 = arith.constant 0 : i32
    %c0_i32_1 = arith.constant 0 : i32
    return %c0_i32, %c0_i32_0 : i32, i32
  }
  func.func @transform_3(%arg0: i32, %arg1: memref<1xi32, #tpu.memory_space<smem>>) -> (i32, i32) {
    %c0_i32 = arith.constant 0 : i32
    %c0_i32_0 = arith.constant 0 : i32
    %c0_i32_1 = arith.constant 0 : i32
    return %c0_i32, %c0_i32_0 : i32, i32
  }
  func.func @transform_4(%arg0: i32, %arg1: memref<1xi32, #tpu.memory_space<smem>>) -> (i32, i32) {
    %c0_i32 = arith.constant 0 : i32
    %c0_i32_0 = arith.constant 0 : i32
    %c0_i32_1 = arith.constant 0 : i32
    return %c0_i32, %c0_i32_0 : i32, i32
  }
  func.func @transform_5(%arg0: i32, %arg1: memref<1xi32, #tpu.memory_space<smem>>) -> (i32, i32) {
    %c0_i32 = arith.constant 0 : i32
    %c0_i32_0 = arith.constant 0 : i32
    %c0_i32_1 = arith.constant 0 : i32
    return %c0_i32, %c0_i32_0 : i32, i32
  }
  func.func @transform_6(%arg0: i32, %arg1: memref<1xi32, #tpu.memory_space<smem>>) -> (i32, i32, i32) {
    %c0 = arith.constant 0 : index
    %0 = memref.load %arg1[%c0] : memref<1xi32, #tpu.memory_space<smem>>
    %c0_i32 = arith.constant 0 : i32
    %c0_i32_0 = arith.constant 0 : i32
    %c0_i32_1 = arith.constant 0 : i32
    return %0, %c0_i32, %c0_i32_0 : i32, i32, i32
  }
  func.func @transform_7(%arg0: i32, %arg1: memref<1xi32, #tpu.memory_space<smem>>) -> (i32, i32, i32) {
    %c0 = arith.constant 0 : index
    %0 = memref.load %arg1[%c0] : memref<1xi32, #tpu.memory_space<smem>>
    %c0_i32 = arith.constant 0 : i32
    %c0_i32_0 = arith.constant 0 : i32
    %c0_i32_1 = arith.constant 0 : i32
    return %0, %c0_i32, %c0_i32_0 : i32, i32, i32
  }
  func.func @transform_8(%arg0: i32, %arg1: memref<1xi32, #tpu.memory_space<smem>>) -> (i32, i32) {
    %c0_i32 = arith.constant 0 : i32
    %c0_i32_0 = arith.constant 0 : i32
    %c0_i32_1 = arith.constant 0 : i32
    return %c0_i32, %c0_i32_0 : i32, i32
  }
  func.func @transform_9(%arg0: i32, %arg1: memref<1xi32, #tpu.memory_space<smem>>) -> (i32, i32) {
    %c0_i32 = arith.constant 0 : i32
    %c0_i32_0 = arith.constant 0 : i32
    %c0_i32_1 = arith.constant 0 : i32
    return %c0_i32, %c0_i32_0 : i32, i32
  }
  func.func @transform_10(%arg0: i32, %arg1: memref<1xi32, #tpu.memory_space<smem>>) -> (i32, i32) {
    %c0_i32 = arith.constant 0 : i32
    %c0_i32_0 = arith.constant 0 : i32
    %c0_i32_1 = arith.constant 0 : i32
    return %c0_i32, %c0_i32_0 : i32, i32
  }
}

</mosaic_0001>

<bundles_post_ra>
// kernel: _controller_step.1
= control target key start
LH: loop header
LB: loop body
LE: loop exit
PB: predicated region body
PF: predicated region fallthrough
CT: control target
= control target key end

     0   :  { %18 = vsyncpa [#allocation5], 0  ;;  %s874_s0 = inlined_call_operand.<no memory space> [shape: s32[1], index: 0, kind: input, shape index: {}]   ;;  %s875_s1 = inlined_call_operand.vmem [shape: f32[2,32], index: 1, kind: input, shape index: {}]   ;;  %s876_s2 = inlined_call_operand.vmem [shape: f32[2,32], index: 2, kind: input, shape index: {}]   ;;  %s877_s3 = inlined_call_operand.vmem [shape: f32[2,32], index: 3, kind: input, shape index: {}]   ;;  %s878_s4 = inlined_call_operand.hbm [shape: f32[32,128], index: 4, kind: input, shape index: {}]   ;;  %s879_s5 = inlined_call_operand.hbm [shape: f32[32,128], index: 5, kind: input, shape index: {}]   ;;  %s880_s6 = inlined_call_operand.vmem [shape: f32[1,128], index: 6, kind: input, shape index: {}]   ;;  %s881_s7 = inlined_call_operand.hbm [shape: f32[9,32,128], index: 7, kind: input, shape index: {}]   ;;  %s882_s8 = inlined_call_operand.vmem [shape: f32[9,1,128], index: 8, kind: input, shape index: {}]   ;;  %s883_s9 = inlined_call_operand.hbm [shape: f32[2,128], index: 9, kind: output, shape index: {0}]   ;;  %s884_s10 = inlined_call_operand.hbm [shape: f32[2,32], index: 10, kind: output, shape index: {1}]   ;;  %s885_s11 = inlined_call_operand.hbm [shape: f32[2,32], index: 11, kind: output, shape index: {2}]  }
   0x1   :  { %19 = vsyncpa [#allocation8], 0 }
   0x2   :  { %20 = vsyncpa [#allocation6], 0 }
   0x3   :  { %21 = vsyncpa [#allocation12], 0  ;;  %s676_s17 = smov [#allocation7]   ;;  %s677_s19 = smov [#allocation4]  }
   0x4   :  { %s45_s18 = sshll.u32 %s676_s17, 4  ;;  %s33_s20 = sshll.u32 %s677_s19, 4  ;;  %s46_s18 = int_to_ptr.vmem [resolvable:$true] %s45_s18  ;;  %s750_s20 = int_to_ptr.vmem [resolvable:$true] %s33_s20 }
   0x5   :  { %s534_s23 = scalar_lea.hbm %s879_s5, 512 }
   0x6   :  { %p535_p0 = scmp.ne.s32.totalorder %s879_s5, %s534_s23  ;;  %p538_p1 = scmp.lt.u32.totalorder %s534_s23, %s879_s5 }
   0x8   :  { %p540_p2 = pnand %p538_p1, %p535_p0 }
   0xa   :  { %543 = shalt.err (!%p540_p2)
}
   0xb   :  { %s544_s28 = scalar_lea.vmem %s46_s18, 512  ;;  %p549_p4 = scmp.lt.s32.totalorder %s46_s18, %s46_s18 }
   0xc   :  { %p545_p3 = scmp.ne.s32.totalorder %s46_s18, %s544_s28  ;;  %p550_p5 = scmp.lt.s32.totalorder %s544_s28, %s544_s28 }
   0xe   :  { %p551_p6 = por %p550_p5, %p549_p4 }
  0x10   :  { %p552_p7 = pnand %p551_p6, %p545_p3 }
  0x12   :  { %555 = shalt.err (!%p552_p7)
}
  0x13   :  { %s678_s29 = smov 128   ;;  %s679_s30 = smov 8  }
  0x14   :  { %51 = dma.hbm_to_vmem [thread:$0]  %s879_s5, 512, %s46_s18, [#allocation8], %s678_s29, %s678_s29, %s679_s30  }
  0x15   :  { %s556_s16 = scalar_lea.hbm %s878_s4, 512 }
  0x16   :  { %p557_p8 = scmp.ne.s32.totalorder %s878_s4, %s556_s16  ;;  %p560_p9 = scmp.lt.u32.totalorder %s556_s16, %s878_s4 }
  0x18   :  { %p562_p10 = pnand %p560_p9, %p557_p8 }
  0x1a   :  { %565 = shalt.err (!%p562_p10)
}
  0x1b   :  { %s566_s23 = scalar_lea.vmem %s750_s20, 512  ;;  %p571_p12 = scmp.lt.s32.totalorder %s750_s20, %s750_s20 }
  0x1c   :  { %p567_p11 = scmp.ne.s32.totalorder %s750_s20, %s566_s23  ;;  %p572_p13 = scmp.lt.s32.totalorder %s566_s23, %s566_s23 }
  0x1e   :  { %p573_p0 = por %p572_p13, %p571_p12 }
  0x20   :  { %p574_p1 = pnand %p573_p0, %p567_p11 }
  0x22   :  { %577 = shalt.err (!%p574_p1)
}
  0x23   :  { %39 = dma.hbm_to_vmem [thread:$0]  %s878_s4, 512, %s750_s20, [#allocation5], %s678_s29, %s678_s29, %s679_s30  }
  0x24   :  { %s443_s26 = sshll.u32 %s874_s0, 9  ;;  %s680_s13 = smov [#allocation9]  }
  0x25   :  { %s62_s12 = scalar_lea.hbm %s881_s7, %s443_s26  ;;  %s63_s14 = sshll.u32 %s680_s13, 4  ;;  %s64_s14 = int_to_ptr.vmem [resolvable:$true] %s63_s14 }
  0x26   :  { %s578_s15 = scalar_lea.hbm %s62_s12, 512  ;;  %s580_s19 = scalar_lea.hbm %s881_s7, 4608 }
  0x27   :  { %p579_p2 = scmp.ne.s32.totalorder %s62_s12, %s578_s15  ;;  %p581_p3 = scmp.lt.u32.totalorder %s62_s12, %s881_s7 }
  0x28   :  { %p582_p4 = scmp.lt.u32.totalorder %s580_s19, %s578_s15  ;;  %p584_p6 = scmp.lt.u32.totalorder %s578_s15, %s62_s12 }
  0x2a   :  { %p583_p5 = por %p582_p4, %p581_p3 }
  0x2c   :  { %p585_p7 = por %p584_p6, %p583_p5 }
  0x2e   :  { %p586_p8 = pnand %p585_p7, %p579_p2 }
  0x30   :  { %589 = shalt.err (!%p586_p8)
}
  0x31   :  { %s590_s4 = scalar_lea.vmem %s64_s14, 512  ;;  %p595_p10 = scmp.lt.s32.totalorder %s64_s14, %s64_s14 }
  0x32   :  { %p591_p9 = scmp.ne.s32.totalorder %s64_s14, %s590_s4  ;;  %p596_p11 = scmp.lt.s32.totalorder %s590_s4, %s590_s4 }
  0x34   :  { %p597_p12 = por %p596_p11, %p595_p10 }
  0x36   :  { %p598_p13 = pnand %p597_p12, %p591_p9 }
  0x38   :  { %601 = shalt.err (!%p598_p13)
}
  0x39   :  { %69 = dma.hbm_to_vmem [thread:$0]  %s62_s12, 512, %s64_s14, [#allocation8], %s678_s29, %s678_s29, %s679_s30  }
  0x3a   :  { %668 = dma.done.wait [#allocation5], 512  }
  0x3b   :  { %669 = vsyncadd [#allocation5], 4294966784 }
  0x3c   :  { %670 = dma.done.wait [#allocation8], 1024  }
  0x3d   :  { %671 = vsyncadd [#allocation8], 4294966272  ;;  %v681_v0 = vmov 0.0|0.0   ;;  %vm682_vm0 = vmmov 0   ;;  %v683_v1 = vmov 0.0   ;;  %v103_v2 = vld [vmem:[#allocation7] sm:$0xff] }
  0x3e   :  { %492 = vmatprep.subr.bf16.mxu0 %v681_v0  ;;  %498 = vmatprep.subr.bf16.mxu1 %v681_v0  ;;  %v104_v3 = vld [vmem:[#allocation7 + $0x8] sm:$0xff]  ;;  %v99_v4 = vld [vmem:[#allocation4] sm:$0xff]  ;;  %v105_v7 = vld [vmem:[#allocation7 + $0x10] sm:$0xff]  ;;  %vm107_vm1 = vcmask 261120   ;;  %s685_s24 = smov 32   ;;  %vm380_vm2 = vcmask 254976  }
  0x3f   :  { %467 = vmatprep.mubr.msk.f32.mxu0 %vm682_vm0, %v683_v1  ;;  %478 = vmatprep.mubr.msk.f32.mxu1 %vm682_vm0, %v683_v1  ;;  %v493_v5 = vpack.c.bf16 %v104_v3, %v103_v2  ;;  %v100_v6 = vld [vmem:[#allocation4 + $0x8] sm:$0xff]  ;;  %v106_v8 = vld [vmem:[#allocation7 + $0x18] sm:$0xff]  ;;  %v101_v10 = vld [vmem:[#allocation4 + $0x10] sm:$0xff] }
  0x40   :  { %v499_v9 = vpack.c.bf16 %v100_v6, %v99_v4  ;;  %v102_v11 = vld [vmem:[#allocation4 + $0x18] sm:$0xff]  ;;  %v496_v12 = vpack.c.bf16 %v106_v8, %v105_v7  ;;  %v97_v14 = vld [vmem:[%s876_s2] sm:$0x3]  ;;  %v291_v36 = vld [vmem:[#allocation9 + $0x8] sm:$0xff] }
  0x41   :  { %494 = vmatpush3.bf16.msra.mxu0 %v493_v5  ;;  %v502_v13 = vpack.c.bf16 %v102_v11, %v101_v10  ;;  %v96_v15 = vld [vmem:[%s875_s1] sm:$0x3]  ;;  %s684_s1 = smov 64   ;;  %v292_v37 = vld [vmem:[#allocation9 + $0x10] sm:$0xff]  ;;  %v293_v39 = vld [vmem:[#allocation9 + $0x18] sm:$0xff] }
  0x42   :  { %500 = vmatpush3.bf16.msra.mxu1 %v499_v9  ;;  %495 = vmatprep.subr.bf16.mxu0 %v681_v0  ;;  %v439_v18 = vld [vmem:[%s880_s6] ss:$0 sm:$0xff]  ;;  %v508_v40 = vpack.c.bf16 %v293_v39, %v292_v37  ;;  %s687_s6 = smov [#allocation11]  }
  0x43   :  { %501 = vmatprep.subr.bf16.mxu1 %v681_v0  ;;  %v98_v24 = vld [vmem:[%s877_s3] sm:$0x3]  ;;  %s686_s3 = smov 96   ;;  %s403_s25 = sshll.u32 %s687_s6, 4  ;;  %s404_s25 = int_to_ptr.vmem [resolvable:$true] %s403_s25 }
  0x44   :  { %v290_v35 = vld [vmem:[#allocation9] sm:$0xff]  ;;  %s602_s26 = scalar_lea.vmem %s404_s25, 32  ;;  %p607_p1 = scmp.lt.s32.totalorder %s404_s25, %s404_s25 }
  0x45   :  { %497 = vmatpush3.bf16.msra.mxu0 %v496_v12  ;;  %v505_v38 = vpack.c.bf16 %v291_v36, %v290_v35  ;;  %p603_p0 = scmp.ne.s32.totalorder %s404_s25, %s602_s26  ;;  %p608_p2 = scmp.lt.s32.totalorder %s602_s26, %s602_s26 }
  0x46   :  { %503 = vmatpush3.bf16.msra.mxu1 %v502_v13  ;;  %504 = vmatprep.subr.bf16.mxu0 %v681_v0 }
  0x47   :  { %p609_p3 = por %p608_p2, %p607_p1 }
  0x48   :  { %468 = vmatmul.mubr.msk.f32.vlgmr.msra.gmra.mrb[0].mxu0 %vm107_vm1, %v97_v14 }
  0x49   :  { %479 = vmatmul.mubr.msk.f32.vlgmr.msra.gmra.mrb[0].mxu1 %vm107_vm1, %v96_v15  ;;  %489 = vmatprep.mubr.msk.f32.mxu0 %vm682_vm0, %v683_v1  ;;  %p610_p4 = pnand %p609_p3, %p603_p0 }
  0x4a   :  { %506 = vmatpush3.bf16.msra.mxu0 %v505_v38 }
  0x4b   :  { %507 = vmatprep.subr.bf16.mxu0 %v681_v0 }
  0x4e   :  { %509 = vmatpush3.bf16.msra.mxu0 %v508_v40 }
 0x11b   :  { %v177_v16 = vpop.f32.mrb[0].mxu0 }
 0x11c   :  { %v250_v17 = vpop.f32.mrb[0].mxu1  ;;  %v469_v19 = vpop.f32.mrb[1].mxu0 }
 0x11d   :  { %v251_v20 = vadd.f32 %v250_v17, %v177_v16  ;;  %v480_v21 = vpop.f32.mrb[1].mxu1 }
 0x11f   :  { %v261_v22 = vadd.f32 %v439_v18, %v251_v20 }
 0x121   :  { %524 = vtanh.f32 %v261_v22  ;;  %v440_v25 = vmul.f32 -1.442695, %v261_v22 }
 0x123   :  { %526 = vpow2.f32 %v440_v25 }
 0x12b   :  { %v525_v23 = vpop.eup %524 }
 0x12c   :  { %275 = vrot.lane.b32.xlu0 %v525_v23, %s684_s1 }
 0x12d   :  { %v527_v26 = vpop.eup %526 }
 0x12e   :  { %v265_v27 = vadd.f32 1.0, %v527_v26 }
 0x130   :  { %270 = vrot.lane.b32.xlu0 %v98_v24, %s685_s24  ;;  %528 = vrcp.f32 %v265_v27 }
 0x13a   :  { %v529_v28 = vpop.eup %528 }
 0x19e   :  { %v276_v29 = vpop.permute.xlu0 %275 }
 0x19f   :  { %v278_v30 = vmul.f32 %v529_v28, %v276_v29 }
 0x1a1   :  { %280 = vrot.lane.b32.xlu1 %v278_v30, %s685_s24 }
 0x1a2   :  { %v271_v31 = vpop.permute.xlu0 %270 }
 0x1a3   :  { %v273_v32 = vmul.f32 %v529_v28, %v271_v31 }
 0x213   :  { %v281_v33 = vpop.permute.xlu1 %280 }
 0x214   :  { %v283_v34 = vadd.f32 %v281_v33, %v273_v32 }
 0x216   :  { %530 = vtanh.f32 %v283_v34 }
 0x220   :  { %v531_v41 = vpop.eup %530 }
 0x221   :  { %286 = vrot.lane.b32.xlu1 %v531_v41, %s684_s1 }
 0x225   :  { %383 = vrot.lane.b32.xlu1 %v283_v34, %s686_s3 }
 0x293   :  { %v287_v42 = vpop.permute.xlu1 %286 }
 0x294   :  { %v289_v43 = vmul.f32 %v529_v28, %v287_v42 }
 0x296   :  { %302 = vrot.lane.b32.xlu0 %v289_v43, %s685_s24 }
 0x297   :  { %v384_v44 = vpop.permute.xlu1 %383 }
 0x298   :  { %386 = vst.msk [vmem:[#allocation13] sm:$0x3] %vm380_vm2, %v384_v44 }
 0x308   :  { %v303_v45 = vpop.permute.xlu0 %302 }
 0x309   :  { %381 = vst.msk [vmem:[#allocation11] sm:$0x3] %vm380_vm2, %v303_v45  ;;  %490 = vmatmul.mubr.msk.f32.vlgmr.msra.gmra.mrb[2].mxu0 %vm107_vm1, %v303_v45 }
 0x30a   :  { %613 = shalt.err (!%p610_p4)
}
 0x30b   :  { %s614_s12 = scalar_lea.hbm %s884_s10, 32 }
 0x30c   :  { %p615_p5 = scmp.ne.s32.totalorder %s884_s10, %s614_s12  ;;  %p618_p6 = scmp.lt.u32.totalorder %s614_s12, %s884_s10 }
 0x30e   :  { %p620_p7 = pnand %p618_p6, %p615_p5 }
 0x310   :  { %623 = shalt.err (!%p620_p7)
}
 0x311   :  { %406 = dma.vmem_to_hbm [thread:$0]  %s404_s25, 32, %s884_s10, [#allocation12]  }
 0x312   :  { %s688_s21 = smov [#allocation13]  }
 0x313   :  { %s413_s22 = sshll.u32 %s688_s21, 4  ;;  %s414_s22 = int_to_ptr.vmem [resolvable:$true] %s413_s22 }
 0x314   :  { %s624_s4 = scalar_lea.vmem %s414_s22, 32  ;;  %p629_p9 = scmp.lt.s32.totalorder %s414_s22, %s414_s22 }
 0x315   :  { %p625_p8 = scmp.ne.s32.totalorder %s414_s22, %s624_s4  ;;  %p630_p10 = scmp.lt.s32.totalorder %s624_s4, %s624_s4 }
 0x317   :  { %p631_p11 = por %p630_p10, %p629_p9 }
 0x319   :  { %p632_p12 = pnand %p631_p11, %p625_p8 }
 0x31b   :  { %635 = shalt.err (!%p632_p12)
}
 0x31c   :  { %s636_s29 = scalar_lea.hbm %s885_s11, 32 }
 0x31d   :  { %p637_p13 = scmp.ne.s32.totalorder %s885_s11, %s636_s29  ;;  %p640_p0 = scmp.lt.u32.totalorder %s636_s29, %s885_s11 }
 0x31f   :  { %p642_p1 = pnand %p640_p0, %p637_p13 }
 0x321   :  { %645 = shalt.err (!%p642_p1)
}
 0x322   :  { %416 = dma.vmem_to_hbm [thread:$0]  %s414_s22, 32, %s885_s11, [#allocation12]  }
 0x323   :  { %p92_p2 = scmp.lt.s32.totalorder %s874_s0, 8  ;;  %s689_s28 = smov [#allocation10]  }
 0x324   :  { %s393_s12 = sshll.u32 %s689_s28, 4  ;;  %s394_s12 = int_to_ptr.vmem [resolvable:$true] %s393_s12 }
 0x325   :  { %s887_s0 = smov (!%p92_p2, %s874_s0), 8  ;;  %s646_s11 = scalar_lea.vmem %s394_s12, 32 }
 0x326   :  { %s94_s27 = scalar_lea.vmem %s882_s8, %s887_s0  ;;  %p647_p3 = scmp.ne.s32.totalorder %s394_s12, %s646_s11 }
 0x327   :  { %v441_v46 = vld [vmem:[%s94_s27] ss:$0 sm:$0xff]  ;;  %p651_p4 = scmp.lt.s32.totalorder %s394_s12, %s394_s12  ;;  %p652_p5 = scmp.lt.s32.totalorder %s646_s11, %s646_s11 }
 0x329   :  { %p653_p6 = por %p652_p5, %p651_p4 }
 0x32b   :  { %p654_p7 = pnand %p653_p6, %p647_p3 }
 0x3dc   :  { %v372_v47 = vpop.f32.mrb[2].mxu0 }
 0x3dd   :  { %v373_v48 = vadd.f32 %v441_v46, %v372_v47  ;;  %v491_v49 = vpop.f32.mrb[3].mxu0 }
 0x3df   :  { %532 = vtanh.f32 %v373_v48 }
 0x3e9   :  { %v533_v50 = vpop.eup %532 }
 0x3ea   :  { %v377_v51 = vmul.f32 2.5, %v533_v50 }
 0x3ec   :  { %378 = vst [vmem:[#allocation10] sm:$0x3] %v377_v51 }
 0x3ed   :  { %657 = shalt.err (!%p654_p7)
}
 0x3ee   :  { %s658_s8 = scalar_lea.hbm %s883_s9, 32 }
 0x3ef   :  { %p659_p8 = scmp.ne.s32.totalorder %s883_s9, %s658_s8  ;;  %p662_p9 = scmp.lt.u32.totalorder %s658_s8, %s883_s9 }
 0x3f1   :  { %p664_p10 = pnand %p662_p9, %p659_p8 }
 0x3f3   :  { %667 = shalt.err (!%p664_p10)
}
 0x3f4   :  { %396 = dma.vmem_to_hbm [thread:$0]  %s394_s12, 32, %s883_s9, [#allocation6]  }
 0x3f5   :  { %672 = dma.done.wait [#allocation6], 32  }
 0x3f6   :  { %673 = vsyncadd [#allocation6], 4294967264 }
 0x3f7   :  { %674 = dma.done.wait [#allocation12], 64  }
 0x3f8   :  { %675 = vsyncadd [#allocation12], 4294967232 }
 0x3f9   :  { %426 = vsyncpa [#allocation5], 1 }
 0x3fa   :  { %427 = vsyncpa [#allocation8], 1 }
 0x3fb   :  { %428 = vsyncpa [#allocation6], 1 }
 0x3fc   :  { %429 = vsyncpa [#allocation12], 1 }

</bundles_post_ra>
